<compile_context>
chip_gen: v6e
topology: v6e:2x2x1
jax: 0.10.0
libtpu: 0.0.40
codegen_flags: <defaults>
</compile_context>

<pallas_src>
import functools

import jax
import jax.numpy as jnp
from jax.experimental import pallas as pl
from jax.experimental.pallas import tpu as pltpu

MAX_TOKENS_PER_STEP = 256   # embedding rows gathered per grid step (tunable)


def _gather_kernel(ids_ref, table_ref, out_ref, copy_sem, *, tokens_per_step):
    # ids_ref:   (n_pad,) int32 in SMEM (scalar prefetch)
    # table_ref: (V, E) float32 in HBM (memory_space=pl.ANY) — raw ref, no auto-DMA
    # out_ref:   (tokens_per_step, E) float32 output block in VMEM
    # copy_sem:  (1,) DMA semaphore shared by all row copies of this step
    base = pl.program_id(0) * tokens_per_step

    # Issue all row-gather DMAs for this step (all in flight at once: the small
    # random HBM reads are latency/issue bound, so deep prefetch hides them).
    @pl.loop(0, tokens_per_step)
    def _start(t):
        row = ids_ref[base + t]
        pltpu.make_async_copy(
            table_ref.at[pl.ds(row, 1), :],
            out_ref.at[pl.ds(t, 1), :],
            copy_sem.at[0],
        ).start()

    # Drain: every copy has the same byte count, so tokens_per_step identical
    # waits on the shared semaphore balance the tokens_per_step starts.
    @pl.loop(0, tokens_per_step)
    def _wait(t):
        pltpu.make_async_copy(
            table_ref.at[pl.ds(0, 1), :],
            out_ref.at[pl.ds(t, 1), :],
            copy_sem.at[0],
        ).wait()


def _choose_tokens_per_step(n):
    # Rows per step: multiple of 8 (dense sublanes), capped at MAX_TOKENS_PER_STEP,
    # and sized so the grid keeps >= 2 steps when possible (v7x has 2 TensorCores).
    half = -(-n // 2)                 # ceil(n / 2)
    tps = ((half + 7) // 8) * 8       # round up to a sublane multiple
    return max(8, min(MAX_TOKENS_PER_STEP, tps))


@jax.jit
def embedding_forward(info, table):
    """info: integer array of any shape; table: (V, E) float32.

    Returns info.shape + (E,) float32, matching torch.nn.Embedding.forward.
    Out-of-range ids are not clamped (parity with torch, which also errors).
    """
    v, e = table.shape
    orig_shape = info.shape
    flat = info.reshape(-1).astype(jnp.int32)
    n = flat.shape[0]

    tps = _choose_tokens_per_step(n)
    n_pad = ((n + tps - 1) // tps) * tps
    # Tail tokens gather row 0 (the padding row); their results are sliced off.
    # TODO(synk): for very large N (hundreds of thousands of tokens) chunk the
    # ids across multiple pallas_call invocations to bound the SMEM footprint.
    ids = jnp.pad(flat, (0, n_pad - n))

    grid = (n_pad // tps,)
    out = pl.pallas_call(
        functools.partial(_gather_kernel, tokens_per_step=tps),
        out_shape=jax.ShapeDtypeStruct((n_pad, e), table.dtype),
        grid_spec=pltpu.PrefetchScalarGridSpec(
            num_scalar_prefetch=1,
            grid=grid,
            in_specs=[pl.BlockSpec(memory_space=pl.ANY)],      # table stays in HBM
            out_specs=pl.BlockSpec((tps, e), lambda i, ids_ref: (i, 0)),
            scratch_shapes=[pltpu.SemaphoreType.DMA((1,))],
        ),
        compiler_params=pltpu.CompilerParams(
            dimension_semantics=("parallel",),
        ),
    )(ids, table)

    return out[:n].reshape(*orig_shape, e)


def make_embedding_table(key, input_size, embedding_size):
    """Deterministic init mirroring torch.nn.Embedding(input_size, embedding_size,
    padding_idx=0): weights ~ N(0, 1), row 0 zeroed."""
    w = jax.random.normal(key, (input_size, embedding_size), dtype=jnp.float32)
    w = w.at[0].set(0.0)  # padding_idx=0
    return w


if __name__ == "__main__":
    key = jax.random.PRNGKey(0)
    k_tab, k_idx = jax.random.split(key)

    input_size = 32       # vocabulary size
    embedding_size = 32   # embedding dim
    batch, seq = 2, 8     # info shape (B, S)

    table = make_embedding_table(k_tab, input_size, embedding_size)
    info = jax.random.randint(k_idx, (batch, seq), 0, input_size, dtype=jnp.int32)

    out = embedding_forward(info, table)
    out = jax.block_until_ready(out)

    # Reference check against plain JAX gather (== torch embedding lookup).
    ref = jnp.take(table, info, axis=0)
    assert out.shape == (batch, seq, embedding_size)
    assert jnp.allclose(out, ref, atol=1e-6, rtol=1e-6)

    print("KERNEL_OK")
</pallas_src>

<mosaic_0001>
module attributes {stable_mosaic.version = 11 : i64} {
  func.func @_gather_kernel(%arg0: i32, %arg1: memref<16xi32, #tpu.memory_space<smem>>, %arg2: memref<32x32xf32, #tpu.memory_space<any>>, %arg3: memref<8x32xf32, #tpu.memory_space<vmem>>, %arg4: memref<1x!tpu.dma_semaphore, #tpu.memory_space<semaphore_mem>>) attributes {dimension_semantics = [#tpu.dimension_semantics<parallel>], iteration_bounds = array<i64: 2>, scalar_prefetch = 1 : i64, scratch_operands = 1 : i64, tpu.core_type = #tpu.core_type<tc>, window_params = [{}, {transform_indices = @transform_1, window_bounds = array<i64: 8, 32>}]} {
    %c8_i32 = arith.constant 8 : i32
    %0 = arith.muli %arg0, %c8_i32 : i32
    %c0_i32 = arith.constant 0 : i32
    %c8_i32_0 = arith.constant 8 : i32
    %1 = arith.addi %c0_i32, %c8_i32_0 : i32
    %c1_i32 = arith.constant 1 : i32
    scf.for %arg5 = %c0_i32 to %1 step %c1_i32  : i32 {
      %c1_i32_6 = arith.constant 1 : i32
      %3 = arith.muli %arg5, %c1_i32_6 : i32
      %c0_i32_7 = arith.constant 0 : i32
      %4 = arith.addi %c0_i32_7, %3 : i32
      %5 = arith.addi %0, %4 : i32
      %6 = arith.index_cast %5 : i32 to index
      %7 = memref.load %arg1[%6] : memref<16xi32, #tpu.memory_space<smem>>
      %c0_i32_8 = arith.constant 0 : i32
      %c0_i32_9 = arith.constant 0 : i32
      %8 = tpu.memref_slice %arg2[%7, %c0_i32_9] : memref<32x32xf32, #tpu.memory_space<any>> -> memref<1x32xf32, #tpu.memory_space<any>>
      %c0_i32_10 = arith.constant 0 : i32
      %9 = tpu.memref_slice %arg3[%4, %c0_i32_10] : memref<8x32xf32, #tpu.memory_space<vmem>> -> memref<1x32xf32, #tpu.memory_space<vmem>>
      %10 = tpu.memref_slice %arg4[%c0_i32_8] : memref<1x!tpu.dma_semaphore, #tpu.memory_space<semaphore_mem>> -> memref<1x!tpu.dma_semaphore, #tpu.memory_space<semaphore_mem>>
      %11 = tpu.memref_squeeze %10 : memref<1x!tpu.dma_semaphore, #tpu.memory_space<semaphore_mem>> -> memref<!tpu.dma_semaphore, #tpu.memory_space<semaphore_mem>>
      tpu.enqueue_dma source(%8 : memref<1x32xf32, #tpu.memory_space<any>>) target(%9 : memref<1x32xf32, #tpu.memory_space<vmem>>) target_semaphore(%11 : memref<!tpu.dma_semaphore, #tpu.memory_space<semaphore_mem>>)
    }
    %c8_i32_1 = arith.constant 8 : i32
    %c0_i32_2 = arith.constant 0 : i32
    %c8_i32_3 = arith.constant 8 : i32
    %2 = arith.addi %c0_i32_2, %c8_i32_3 : i32
    %c1_i32_4 = arith.constant 1 : i32
    scf.for %arg5 = %c0_i32_2 to %2 step %c1_i32_4  : i32 {
      %c1_i32_6 = arith.constant 1 : i32
      %3 = arith.muli %arg5, %c1_i32_6 : i32
      %c0_i32_7 = arith.constant 0 : i32
      %4 = arith.addi %c0_i32_7, %3 : i32
      %c0_i32_8 = arith.constant 0 : i32
      %c0_i32_9 = arith.constant 0 : i32
      %c0_i32_10 = arith.constant 0 : i32
      %5 = tpu.memref_slice %arg2[%c0_i32_9, %c0_i32_10] : memref<32x32xf32, #tpu.memory_space<any>> -> memref<1x32xf32, #tpu.memory_space<any>>
      %c0_i32_11 = arith.constant 0 : i32
      %6 = tpu.memref_slice %arg3[%4, %c0_i32_11] : memref<8x32xf32, #tpu.memory_space<vmem>> -> memref<1x32xf32, #tpu.memory_space<vmem>>
      %7 = tpu.memref_slice %arg4[%c0_i32_8] : memref<1x!tpu.dma_semaphore, #tpu.memory_space<semaphore_mem>> -> memref<1x!tpu.dma_semaphore, #tpu.memory_space<semaphore_mem>>
      %8 = tpu.memref_squeeze %7 : memref<1x!tpu.dma_semaphore, #tpu.memory_space<semaphore_mem>> -> memref<!tpu.dma_semaphore, #tpu.memory_space<semaphore_mem>>
      tpu.wait_dma2 semaphore(%8 : memref<!tpu.dma_semaphore, #tpu.memory_space<semaphore_mem>>) src(%5 : memref<1x32xf32, #tpu.memory_space<any>>) dst(%6 : memref<1x32xf32, #tpu.memory_space<vmem>>)
    }
    %c8_i32_5 = arith.constant 8 : i32
    return
  }
  func.func @transform_1(%arg0: i32, %arg1: memref<16xi32, #tpu.memory_space<smem>>) -> (i32, i32) {
    %c0_i32 = arith.constant 0 : i32
    %c0_i32_0 = arith.constant 0 : i32
    return %arg0, %c0_i32 : i32, i32
  }
}

</mosaic_0001>

<bundles_post_ra>
// kernel: embedding_forward.1
= control target key start
LH: loop header
LB: loop body
LE: loop exit
PB: predicated region body
PF: predicated region fallthrough
CT: control target
= control target key end

     0   :  { %s459_s0 = inlined_call_operand.vmem [shape: s32[16], index: 0, kind: input, shape index: {}]   ;;  %s460_s1 = inlined_call_operand.hbm [shape: f32[32,32], index: 1, kind: input, shape index: {}]   ;;  %s461_s2 = inlined_call_operand.hbm [shape: f32[16,32], index: 2, kind: output, shape index: {}]  }
   0x1   :  { %s7_s11 = sshll.u32 %s459_s0, 4  ;;  %s8_s11 = int_to_ptr.vmem [resolvable:$true] %s7_s11 }
   0x2   :  { %s221_s12 = scalar_lea.vmem %s8_s11, 16  ;;  %p226_p1 = scmp.lt.s32.totalorder %s8_s11, %s8_s11 }
   0x3   :  { %p222_p0 = scmp.ne.s32.totalorder %s8_s11, %s221_s12  ;;  %p227_p2 = scmp.lt.s32.totalorder %s221_s12, %s221_s12 }
   0x5   :  { %p228_p3 = por %p227_p2, %p226_p1 }
   0x7   :  { %p229_p4 = pnand %p228_p3, %p222_p0 }
   0x9   :  { %232 = shalt.err (!%p229_p4)  }
   0xa   :  { %s329_s13 = smov [#allocation4]  }
   0xb   :  { %10 = dma.vmem_to_smem %s8_s11, 16, %s329_s13, [#allocation3] }
   0xc   :  { %301 = dma.done.wait [#allocation3], 16 }
   0xd   :  { %302 = vsyncadd [#allocation3], 4294967280 }
   0xe   :  { %12 = sfence }
   0xf   :  { %13 = vsyncpa [#allocation6], 0 }
  0x10   :  { %15 = vsyncpa [#allocation6 + $0x1], 0  ;;  %s349_s14 = smov 0   ;;  %s351_s15 = smov 0  }
  0x11   :  { %s353_s0 = smov 0  }
  0x12 LB: > { %s162_s16 = sadd.s32 4294967295, %s319_s0   ;;  %s366_s17 = sadd.s32 1, %s319_s0   ;;  %s319_s0 = sphi %s353_s0, %s466_s0   ;;  %s315_s15 = sphi %s351_s15, %s465_s15   ;;  %s311_s14 = sphi %s349_s14, %s464_s14  }
  0x13   : > { %s24_s18 = ssub.s32 %s319_s0, %s366_s17  ;;  %s27_s19 = sadd.s32 1, %s315_s15 }
  0x14   : > { %p25_p5 = scmp.eq.s32.totalorder %s24_s18, 0  ;;  %p163_p6 = scmp.ne.s32.totalorder %s24_s18, 0 }
  0x15   : > { %p31_p7 = scmp.eq.s32.totalorder %s319_s0, 1  ;;  %p36_p8 = scmp.ne.s32.totalorder %s315_s15, %s311_s14 }
  0x16   : > { %s375_s20 = scalar_select %p25_p5, %s315_s15, %s27_s19  }
  0x17   : > { %p377_p9 = por %p163_p6, %p31_p7  ;;  %p37_p10 = scmp.eq.s32.totalorder %s162_s16, 1 }
  0x18   : > { %p164_p12 = scmp.ge.s32.totalorder %s319_s0, 2 }
  0x19   : > { %p381_p11 = por %p37_p10, %p36_p8  ;;  %s51_s23 = sand.u32 (!%p164_p12), 1, %s315_s15  }
  0x1a   : > { %46 = sbr.rel (%p164_p12) target bundleno = 93 (0x5d), region = 12  ;;  %s166_s24 = sshll.u32 (!%p164_p12), %s319_s0, 3 }
  0x1b   : > { %s390_s25 = sshll.u32 (!%p164_p12), %s51_s23, 3  ;;  %s393_s27 = smov (!%p164_p12), 0  }
  0x1c   : > { %s53_s26 = scalar_lea.vmem (!%p164_p12), [#allocation5], %s390_s25 }
  0x1f LB: >> { %s61_s28 = sadd.s32 %s323_s27, %s166_s24  ;;  %s65_s29 = scalar_lea.vmem %s53_s26, %s323_s27 [#allocation5]  ;;  %s323_s27 = sphi %s393_s27, %s60_s27  }
  0x20   : >> { %s62_s30 = sld [smem:[#allocation4 + %s61_s28]]  ;;  %s73_s3 = sshll.u32 %s65_s29, 4  ;;  %s74_s3 = int_to_ptr.vmem [resolvable:$true] %s73_s3 }
  0x21   : >> { %s235_s11 = scalar_lea.hbm %s460_s1, 512 }
  0x26   : >> { %s167_s4 = sshll.u32 %s62_s30, 4 }
  0x27   : >> { %s64_s7 = scalar_lea.hbm %s460_s1, %s167_s4 }
  0x28   : >> { %s233_s8 = scalar_lea.hbm %s64_s7, 16  ;;  %p236_p0 = scmp.lt.s32.totalorder %s64_s7, %s460_s1 }
  0x29   : >> { %p234_p13 = scmp.ne.s32.totalorder %s64_s7, %s233_s8  ;;  %p237_p1 = scmp.lt.s32.totalorder %s235_s11, %s233_s8 }
  0x2b   : >> { %p238_p2 = por %p237_p1, %p236_p0 }
  0x2d   : >> { %p239_p3 = pnand %p238_p2, %p234_p13 }
  0x2f   : >> { %242 = shalt.err (!%p239_p3)  }
  0x30   : >> { %s243_s16 = scalar_lea.vmem %s74_s3, 16  ;;  %s330_s18 = smov [#allocation5]  }
  0x31   : >> { %p244_p4 = scmp.ne.s32.totalorder %s74_s3, %s243_s16  ;;  %s245_s19 = sshll.u32 %s330_s18, 4  ;;  %s413_s19 = int_to_ptr.vmem [resolvable:$false] %s245_s19 }
  0x32   : >> { %s247_s28 = scalar_lea.vmem %s413_s19, 256  ;;  %p248_p5 = scmp.lt.s32.totalorder %s74_s3, %s413_s19 }
  0x33   : >> { %p249_p6 = scmp.lt.s32.totalorder %s247_s28, %s243_s16 }
  0x35   : >> { %p250_p7 = por %p249_p6, %p248_p5 }
  0x37   : >> { %p251_p8 = pnand %p250_p7, %p244_p4 }
  0x39   : >> { %254 = shalt.err (!%p251_p8)  }
  0x3a   : >> { %76 = dma.hbm_to_vmem [thread:$0]  %s64_s7, 16, %s74_s3, [#allocation2] }
  0x3b   : >> { %s60_s27 = sadd.s32 1, %s323_s27  }
  0x3c   : >> { %p57_p10 = scmp.ge.s32.totalorder %s60_s27, 8  }
  0x3d   : > { %s325_s29 = smov (%p57_p10), 0  }
  0x3e   : > { %59 = sbr.rel (!%p57_p10) target bundleno = 31 (0x1f), region = 64 }
  0x43 LB: >> { %303 = dma.done.wait [#allocation2], 16  ;;  %s327_s29 = sphi %s325_s29, %s82_s29  }
  0x44   : >> { %304 = vsyncadd [#allocation2], 4294967280  ;;  %s82_s29 = sadd.s32 1, %s327_s29  }
  0x45   : >> { %p79_p12 = scmp.ge.s32.totalorder %s82_s29, 8  }
  0x46   : > { %s169_s30 = sshll.u32 (%p79_p12), %s319_s0, 7  ;;  %s100_s4 = sshll.u32 (%p79_p12), %s53_s26, 4  ;;  %s101_s4 = int_to_ptr.vmem [resolvable:$true] %s100_s4 }
  0x47   : > { %81 = sbr.rel (!%p79_p12) target bundleno = 67 (0x43), region = 75  ;;  %s98_s24 = scalar_lea.hbm (%p79_p12), %s461_s2, %s169_s30 }
  0x48   : > { %s87_s5 = scalar_lea.sflag (%p79_p12), [#allocation6], %s51_s23  ;;  %s255_s6 = scalar_lea.vmem (%p79_p12), %s101_s4, 128 }
  0x49   : > { %p256_p13 = scmp.ne.s32.totalorder (%p79_p12), %s101_s4, %s255_s6  ;;  %p262_p2 = scmp.lt.s32.totalorder (%p79_p12), %s101_s4, %s413_s19 }
  0x4a   : > { %p263_p3 = scmp.lt.s32.totalorder (%p79_p12), %s247_s28, %s255_s6 }
  0x4b   : > { %p257_p0 = pnand (%p79_p12), %p256_p13, %p377_p9 }
  0x4c   : > { %p264_p4 = por %p263_p3, %p262_p2 }
  0x4d   : > { %p258_p1 = pneg %p257_p0 }
  0x4f   : > { %p265_p5 = pnand %p264_p4, %p258_p1 }
  0x51   : > { %268 = shalt.err (!%p265_p5)
}
  0x52   : > { %s269_s7 = scalar_lea.hbm %s98_s24, 128  ;;  %s273_s23 = scalar_lea.hbm %s461_s2, 256 }
  0x53   : > { %p270_p6 = scmp.ne.s32.totalorder %s98_s24, %s269_s7  ;;  %p274_p10 = scmp.lt.s32.totalorder %s98_s24, %s461_s2 }
  0x54   : > { %p275_p12 = scmp.lt.s32.totalorder %s273_s23, %s269_s7 }
  0x55   : > { %p271_p7 = pnand %p270_p6, %p377_p9 }
  0x56   : > { %p276_p13 = por %p275_p12, %p274_p10 }
  0x57   : > { %p272_p8 = pneg %p271_p7 }
  0x59   : > { %p277_p0 = pnand %p276_p13, %p272_p8 }
  0x5b   : > { %280 = shalt.err (!%p277_p0)
}
  0x5c   : > { %173 = dma.vmem_to_hbm [thread:$0]  (%p377_p9), %s101_s4, 128, %s98_s24, %s87_s5  }
  0x5d PF: > { %p179_p1 = scmp.ge.s32.totalorder %s319_s0, 1  ;;  %s112_s10 = sand.u32 1, %s311_s14  }
  0x5e   : > { %s113_s11 = scalar_lea.sflag [#allocation6], %s112_s10 }
  0x5f   : > { %p176_p2 = pnand %p179_p1, %p381_p11 }
  0x61   : > { %p177_p3 = pneg %p176_p2 }
  0x63   : > { %306 = dma.done.wait (%p177_p3), %s113_s11, 128  }
  0x64   : > { %308 = vsyncadd (%p177_p3), %s113_s11, 4294967168  ;;  %p18_p4 = scmp.ge.s32.totalorder %s366_s17, 3   ;;  %s464_s14 = smov %s315_s15 }
  0x65   : > { %s465_s15 = smov %s375_s20  ;;  %s466_s0 = smov %s366_s17 }
  0x66   :  { %20 = sbr.rel (!%p18_p4) target bundleno = 18 (0x12), region = 86 }
  0x6b   :  { %118 = vsyncpa [#allocation6], 1 }
  0x6c   :  { %120 = vsyncpa [#allocation6 + $0x1], 1 }
  0x6d   :  { %121 = vsyncmov [#allocation2] }
  0x70   :  { %s122_s0 = vpop.sfrf %121 }
  0x71   :  { %p172_p9 = scmp.ne.s32.totalorder %s122_s0, 0 }
  0x73   :  { %126 = shalt.err (%p172_p9)  }

</bundles_post_ra>
